<compile_context>
chip_gen: v7x
topology: tpu7x:2x2x1
jax: 0.10.0
libtpu: 0.0.40
codegen_flags: <defaults>
</compile_context>

<pallas_src>
import jax
import jax.numpy as jnp
from jax.experimental import pallas as pl
from jax.experimental.pallas import tpu as pltpu


def _round_up(x, m):
    return ((x + m - 1) // m) * m


def _tpu_generation():
    """Best-effort TPU generation detection ('v5' / 'v6' / 'v7' / None)."""
    try:
        kind = jax.devices()[0].device_kind.lower()
    except Exception:
        return None
    if "v7" in kind or "tpu7" in kind or "7x" in kind:
        return "v7"
    if "v6" in kind or "tpu6" in kind:
        return "v6"
    if "v5" in kind or "tpu5" in kind:
        return "v5"
    return None


def _vmem_config():
    """(vmem_limit_bytes, prefer_multi_core) per TPU generation."""
    gen = _tpu_generation()
    if gen == "v7":
        # 64 MiB physical VMEM per TensorCore, 2 TCs/chip: keep blocks small
        # enough that an even >=2-step grid exists to feed both cores.
        return 48 * 1024 * 1024, True
    if gen in ("v5", "v6"):
        # single TensorCore, 128 MiB physical VMEM: take the biggest blocks.
        return 80 * 1024 * 1024, False
    # unknown generation: conservative.
    return 48 * 1024 * 1024, False


def _choose_blocks(B, t_out_p, t_in_p, d_dec_p, d_enc_p, *,
                   act_itemsize, w_itemsize, h_itemsize, a_itemsize,
                   budget_bytes, prefer_multi_core):
    """Pick (block_b, block_t) whose per-step working set fits the VMEM budget."""
    b_divs = [d for d in range(1, B + 1) if B % d == 0]
    t_divs = [t for t in range(8, t_out_p + 1, 8) if t_out_p % t == 0]

    # Invariant inputs (weights, bias, mask row), double-buffered by the pipeline.
    weight_bytes = 2 * (w_itemsize * (2 * d_dec_p * d_enc_p + d_dec_p * d_dec_p)
                        + 4 * (d_dec_p + t_in_p))

    def step_bytes(bb, bt):
        # double-buffered activation input blocks (dec, enc)
        io = 2 * act_itemsize * (bb * bt * d_dec_p + bb * t_in_p * d_enc_p)
        # double-buffered output blocks (attn_h, alpha)
        io += 2 * (h_itemsize * bb * bt * d_dec_p + a_itemsize * bb * bt * t_in_p)
        # f32 intermediates live together: energy, scores, e, alpha, context, out
        interm = 4 * bb * bt * (2 * d_enc_p + 3 * t_in_p + d_dec_p)
        # staging copies of the activation blocks around dtype casts (worst case)
        interm += 4 * (bb * bt * d_dec_p + bb * t_in_p * d_enc_p)
        return io + interm + weight_bytes

    fitting = [(bb, bt) for bb in b_divs for bt in t_divs
               if step_bytes(bb, bt) <= budget_bytes]
    if not fitting:
        return 1, 8  # smallest legal block; compiler may still spill for huge dims

    def work(c):
        return c[0] * c[1]

    if prefer_multi_core:
        multi = [c for c in fitting
                 if (B // c[0]) * (t_out_p // c[1]) >= 2
                 and ((B // c[0]) * (t_out_p // c[1])) % 2 == 0]
        if multi:
            return max(multi, key=work)
    return max(fitting, key=work)


def _make_attention_kernel(mxu_dtype):
    cast = (lambda x: x.astype(mxu_dtype)) if mxu_dtype is not None else (lambda x: x)

    def kernel(dec_ref, enc_ref, mask_ref, win_t_ref, wctx_t_ref, wdec_t_ref,
               bias_ref, attn_h_ref, alpha_ref):
        b_blk, t_blk, d_dec_p = dec_ref.shape
        _, t_in_p, d_enc_p = enc_ref.shape

        dec_m = cast(dec_ref[...])                      # (b, t_blk, d_dec_p)
        enc_m = cast(enc_ref[...])                      # (b, t_in_p, d_enc_p)

        # ---- energy = dec @ W_in^T : fold (b * t_blk) into one MXU M dim ----
        dec2d = dec_m.reshape(b_blk * t_blk, d_dec_p)
        energy = jnp.dot(dec2d, win_t_ref[...],
                         preferred_element_type=jnp.float32)
        energy = energy.reshape(b_blk, t_blk, d_enc_p)

        # ---- scores = bmm(energy, enc^T): contract feature dims, no transpose ----
        scores = jax.lax.dot_general(
            cast(energy), enc_m,
            dimension_numbers=(((2,), (2,)), ((0,), (0,))),
            preferred_element_type=jnp.float32)         # (b, t_blk, t_in_p)

        # Additive key-padding mask (0 valid / -1e30 padded): one broadcast add.
        scores = scores + mask_ref[...]

        # ---- numerically stable softmax over T_in (f32, VPU + EUP) ----
        m = jnp.max(scores, axis=-1, keepdims=True)
        e = jnp.exp(scores - m)
        denom = jnp.sum(e, axis=-1, keepdims=True)
        alpha = e * pl.reciprocal(denom, approx=False)  # exact; EUP slot anyway
        alpha_ref[...] = alpha.astype(alpha_ref.dtype)

        # ---- context = bmm(alpha, enc) ----
        context = jax.lax.dot_general(
            cast(alpha), enc_m,
            dimension_numbers=(((2,), (1,)), ((0,), (0,))),
            preferred_element_type=jnp.float32)         # (b, t_blk, d_enc_p)

        # ---- w_out([context, dec]) + b as two folded (b*t, .) matmuls ----
        ctx2d = context.reshape(b_blk * t_blk, d_enc_p)
        out = (jnp.dot(cast(ctx2d), wctx_t_ref[...],
                       preferred_element_type=jnp.float32)
               + jnp.dot(dec2d, wdec_t_ref[...],
                         preferred_element_type=jnp.float32)
               + bias_ref[...])                         # bias (1, d_dec_p) broadcasts

        attn_h_ref[...] = jnp.tanh(out).reshape(
            b_blk, t_blk, d_dec_p).astype(attn_h_ref.dtype)

    return kernel


def attention_forward(dec_out, enc_out, w_in, w_out, b_out, *,
                      block_b=None, block_t=None, mxu_dtype=None,
                      alpha_dtype=None):
    """dec_out: (B, T_out, d_dec), enc_out: (B, T_in, d_enc)
       w_in:  (d_enc, d_dec)          -- nn.Linear(dec_hidden, enc_hidden).weight
       w_out: (d_dec, d_dec + d_enc)  -- nn.Linear(dec+enc, dec).weight
       b_out: (d_dec,)                -- nn.Linear(dec+enc, dec).bias
       mxu_dtype: e.g. jnp.bfloat16 to halve DMA bytes / run MXU in bf16 (f32 acc).
       alpha_dtype: dtype of the returned attention weights (default: input dtype).
    """
    B, T_out, d_dec = dec_out.shape
    _, T_in, d_enc = enc_out.shape

    out_dtype = dec_out.dtype
    alpha_dtype = out_dtype if alpha_dtype is None else alpha_dtype

    # Lane/sublane-aligned padded sizes. Feature dims go to multiples of 128
    # (lane-dense stores). T_in only pads to a multiple of 8 when small: padding
    # tiny key counts to 128 would multiply bmm/exp work and alpha writeback.
    d_dec_p = _round_up(d_dec, 128)
    d_enc_p = _round_up(d_enc, 128)
    t_in_p = _round_up(T_in, 8) if T_in < 128 else _round_up(T_in, 128)
    t_out_p = _round_up(T_out, 8)

    # Pre-split / pre-transpose weights. PyTorch concat order is [context, dec_out].
    win_t = w_in.T                       # (d_dec, d_enc)
    wctx_t = w_out[:, :d_enc].T          # (d_enc, d_dec)
    wdec_t = w_out[:, d_enc:].T          # (d_dec, d_dec)

    def pad_to(a, shape):
        return jnp.pad(a, [(0, s - d) for s, d in zip(shape, a.shape)])

    dec_p = pad_to(dec_out, (B, t_out_p, d_dec_p))
    enc_p = pad_to(enc_out, (B, t_in_p, d_enc_p))
    win_t_p = pad_to(win_t, (d_dec_p, d_enc_p))
    wctx_t_p = pad_to(wctx_t, (d_enc_p, d_dec_p))
    wdec_t_p = pad_to(wdec_t, (d_dec_p, d_dec_p))
    bias_p = pad_to(b_out.reshape(1, d_dec), (1, d_dec_p)).astype(jnp.float32)

    # Precomputed additive key-padding mask row (replaces per-step iota+where).
    key_idx = jnp.arange(t_in_p, dtype=jnp.int32)
    mask_row = jnp.where(key_idx < T_in, 0.0, -1e30).astype(jnp.float32)
    mask_row = mask_row.reshape(1, t_in_p)

    if mxu_dtype is not None:
        # Cast activations AND weights in the wrapper: halves DMA bytes and
        # removes the in-kernel whole-block converts. Accumulation stays f32.
        dec_p = dec_p.astype(mxu_dtype)
        enc_p = enc_p.astype(mxu_dtype)
        win_t_p = win_t_p.astype(mxu_dtype)
        wctx_t_p = wctx_t_p.astype(mxu_dtype)
        wdec_t_p = wdec_t_p.astype(mxu_dtype)

    vmem_limit, prefer_multi_core = _vmem_config()
    bb, bt = _choose_blocks(
        B, t_out_p, t_in_p, d_dec_p, d_enc_p,
        act_itemsize=jnp.dtype(dec_p.dtype).itemsize,
        w_itemsize=jnp.dtype(win_t_p.dtype).itemsize,
        h_itemsize=jnp.dtype(out_dtype).itemsize,
        a_itemsize=jnp.dtype(alpha_dtype).itemsize,
        budget_bytes=int(vmem_limit * 0.9),
        prefer_multi_core=prefer_multi_core)
    if block_b is not None:
        bb = block_b
    if block_t is not None:
        bt = block_t
    assert B % bb == 0, "block_b must divide the batch size"
    assert t_out_p % bt == 0, "block_t must divide the padded T_out"

    grid = (B // bb, t_out_p // bt)
    kernel = _make_attention_kernel(mxu_dtype)

    # TODO(synk): invariant weight inputs are still double-buffered; a
    # pipeline_mode=pl.Buffered(1) on their specs would reclaim VMEM on v7x.
    attn_h_p, alpha_p = pl.pallas_call(
        kernel,
        out_shape=(
            jax.ShapeDtypeStruct((B, t_out_p, d_dec_p), out_dtype),
            jax.ShapeDtypeStruct((B, t_out_p, t_in_p), alpha_dtype),
        ),
        grid_spec=pltpu.PrefetchScalarGridSpec(
            num_scalar_prefetch=0,
            grid=grid,
            in_specs=[
                pl.BlockSpec((bb, bt, d_dec_p), lambda b, t: (b, t, 0)),
                pl.BlockSpec((bb, t_in_p, d_enc_p), lambda b, t: (b, 0, 0)),
                pl.BlockSpec((1, t_in_p), lambda b, t: (0, 0)),
                pl.BlockSpec((d_dec_p, d_enc_p), lambda b, t: (0, 0)),
                pl.BlockSpec((d_enc_p, d_dec_p), lambda b, t: (0, 0)),
                pl.BlockSpec((d_dec_p, d_dec_p), lambda b, t: (0, 0)),
                pl.BlockSpec((1, d_dec_p), lambda b, t: (0, 0)),
            ],
            out_specs=[
                pl.BlockSpec((bb, bt, d_dec_p), lambda b, t: (b, t, 0)),
                pl.BlockSpec((bb, bt, t_in_p), lambda b, t: (b, t, 0)),
            ],
        ),
        compiler_params=pltpu.CompilerParams(
            dimension_semantics=("parallel", "parallel"),
            vmem_limit_bytes=vmem_limit,
        ),
    )(dec_p, enc_p, mask_row, win_t_p, wctx_t_p, wdec_t_p, bias_p)

    # Slice the padding back off.
    return attn_h_p[:, :T_out, :d_dec], alpha_p[:, :T_out, :T_in]


def reference_forward(dec_out, enc_out, w_in, w_out, b_out):
    """Pure-JAX reference matching the PyTorch forward exactly."""
    energy = jnp.einsum("btd,ed->bte", dec_out, w_in)            # (B, T_out, d_enc)
    scores = jnp.einsum("bte,bke->btk", energy, enc_out)         # (B, T_out, T_in)
    alpha = jax.nn.softmax(scores, axis=-1)
    context = jnp.einsum("btk,bke->bte", alpha, enc_out)         # (B, T_out, d_enc)
    concat = jnp.concatenate([context, dec_out], axis=-1)
    out = jnp.einsum("btc,dc->btd", concat, w_out) + b_out
    return jnp.tanh(out), alpha


if __name__ == "__main__":
    # Small, deterministic shapes consistent with the module.
    B, T_out, T_in = 2, 8, 8
    d_dec, d_enc = 32, 32  # dec_hidden, enc_hidden

    key = jax.random.PRNGKey(0)
    k1, k2, k3, k4, k5 = jax.random.split(key, 5)

    dec_out = jax.random.normal(k1, (B, T_out, d_dec), dtype=jnp.float32)
    enc_out = jax.random.normal(k2, (B, T_in, d_enc), dtype=jnp.float32)

    # Parameters (deterministic init; shapes follow nn.Linear conventions).
    w_in = jax.random.normal(k3, (d_enc, d_dec), dtype=jnp.float32) * 0.1
    w_out = jax.random.normal(k4, (d_dec, d_dec + d_enc), dtype=jnp.float32) * 0.1
    b_out = jax.random.normal(k5, (d_dec,), dtype=jnp.float32) * 0.1

    attn_h, alpha = attention_forward(dec_out, enc_out, w_in, w_out, b_out)
    jax.block_until_ready((attn_h, alpha))

    ref_h, ref_a = reference_forward(dec_out, enc_out, w_in, w_out, b_out)
    assert attn_h.shape == ref_h.shape and alpha.shape == ref_a.shape
    assert jnp.allclose(attn_h, ref_h, atol=1e-3, rtol=1e-3), "attn_h mismatch"
    assert jnp.allclose(alpha, ref_a, atol=1e-3, rtol=1e-3), "alpha mismatch"

    print("KERNEL_OK")
</pallas_src>

<mosaic_0001>
module attributes {stable_mosaic.version = 11 : i64} {
  func.func @kernel(%arg0: i32, %arg1: i32, %arg2: memref<2x8x128xf32, #tpu.memory_space<vmem>>, %arg3: memref<2x8x128xf32, #tpu.memory_space<vmem>>, %arg4: memref<1x8xf32, #tpu.memory_space<vmem>>, %arg5: memref<128x128xf32, #tpu.memory_space<vmem>>, %arg6: memref<128x128xf32, #tpu.memory_space<vmem>>, %arg7: memref<128x128xf32, #tpu.memory_space<vmem>>, %arg8: memref<1x128xf32, #tpu.memory_space<vmem>>, %arg9: memref<2x8x128xf32, #tpu.memory_space<vmem>>, %arg10: memref<2x8x8xf32, #tpu.memory_space<vmem>>) attributes {dimension_semantics = [#tpu.dimension_semantics<parallel>, #tpu.dimension_semantics<parallel>], iteration_bounds = array<i64: 1, 1>, scalar_prefetch = 0 : i64, scratch_operands = 0 : i64, tpu.core_type = #tpu.core_type<tc>, window_params = [{transform_indices = @transform_0, window_bounds = array<i64: 2, 8, 128>}, {transform_indices = @transform_1, window_bounds = array<i64: 2, 8, 128>}, {pipeline_mode = #tpu.pipeline_mode<synchronous>, transform_indices = @transform_2, window_bounds = array<i64: 1, 8>}, {pipeline_mode = #tpu.pipeline_mode<synchronous>, transform_indices = @transform_3, window_bounds = array<i64: 128, 128>}, {pipeline_mode = #tpu.pipeline_mode<synchronous>, transform_indices = @transform_4, window_bounds = array<i64: 128, 128>}, {pipeline_mode = #tpu.pipeline_mode<synchronous>, transform_indices = @transform_5, window_bounds = array<i64: 128, 128>}, {pipeline_mode = #tpu.pipeline_mode<synchronous>, transform_indices = @transform_6, window_bounds = array<i64: 1, 128>}, {transform_indices = @transform_7, window_bounds = array<i64: 2, 8, 128>}, {transform_indices = @transform_8, window_bounds = array<i64: 2, 8, 8>}]} {
    %c0 = arith.constant 0 : index
    %c0_0 = arith.constant 0 : index
    %c0_1 = arith.constant 0 : index
    %0 = vector.load %arg2[%c0, %c0_0, %c0_1] : memref<2x8x128xf32, #tpu.memory_space<vmem>>, vector<2x8x128xf32>
    %c0_2 = arith.constant 0 : index
    %c0_3 = arith.constant 0 : index
    %c0_4 = arith.constant 0 : index
    %1 = vector.load %arg3[%c0_2, %c0_3, %c0_4] : memref<2x8x128xf32, #tpu.memory_space<vmem>>, vector<2x8x128xf32>
    %2 = vector.shape_cast %0 : vector<2x8x128xf32> to vector<16x128xf32>
    %c0_5 = arith.constant 0 : index
    %c0_6 = arith.constant 0 : index
    %3 = vector.load %arg5[%c0_5, %c0_6] : memref<128x128xf32, #tpu.memory_space<vmem>>, vector<128x128xf32>
    %cst = arith.constant dense<0.000000e+00> : vector<16x128xf32>
    %4 = tpu.matmul %2, %3, %cst {dimension_numbers = #tpu.dot_dimension_numbers<[1], [0], [0], [1], [0, 0, 1, 1], [], []>} : vector<16x128xf32>, vector<128x128xf32>, vector<16x128xf32> -> vector<16x128xf32>
    %5 = vector.shape_cast %4 : vector<16x128xf32> to vector<2x8x128xf32>
    %cst_7 = arith.constant dense<0.000000e+00> : vector<2x8x8xf32>
    %6 = tpu.matmul %5, %1, %cst_7 {dimension_numbers = #tpu.dot_dimension_numbers<[2], [2], [1], [1], [0, 0, 0, 1, 1, 1], [0], [0]>} : vector<2x8x128xf32>, vector<2x8x128xf32>, vector<2x8x8xf32> -> vector<2x8x8xf32>
    %c0_8 = arith.constant 0 : index
    %c0_9 = arith.constant 0 : index
    %7 = vector.load %arg4[%c0_8, %c0_9] : memref<1x8xf32, #tpu.memory_space<vmem>>, vector<1x8xf32>
    %8 = vector.shape_cast %7 : vector<1x8xf32> to vector<1x1x8xf32>
    %9 = vector.broadcast %8 : vector<1x1x8xf32> to vector<2x8x8xf32>
    %10 = arith.addf %6, %9 : vector<2x8x8xf32>
    %cst_10 = arith.constant dense<0xFF800000> : vector<2x8xf32>
    %11 = vector.multi_reduction <maximumf>, %10, %cst_10 [2] : vector<2x8x8xf32> to vector<2x8xf32>
    %12 = vector.shape_cast %11 : vector<2x8xf32> to vector<2x8x1xf32>
    %13 = vector.broadcast %12 : vector<2x8x1xf32> to vector<2x8x8xf32>
    %14 = arith.subf %10, %13 : vector<2x8x8xf32>
    %15 = math.exp %14 : vector<2x8x8xf32>
    %cst_11 = arith.constant dense<0.000000e+00> : vector<2x8xf32>
    %16 = vector.multi_reduction <add>, %15, %cst_11 [2] : vector<2x8x8xf32> to vector<2x8xf32>
    %17 = vector.shape_cast %16 : vector<2x8xf32> to vector<2x8x1xf32>
    %18 = tpu.reciprocal %17 : vector<2x8x1xf32> -> vector<2x8x1xf32>
    %19 = vector.broadcast %18 : vector<2x8x1xf32> to vector<2x8x8xf32>
    %20 = arith.mulf %15, %19 : vector<2x8x8xf32>
    %c0_12 = arith.constant 0 : index
    %c0_13 = arith.constant 0 : index
    %c0_14 = arith.constant 0 : index
    %21 = vector.load %arg10[%c0_12, %c0_13, %c0_14] : memref<2x8x8xf32, #tpu.memory_space<vmem>>, vector<2x8x8xf32>
    tpu.vector_store %arg10[%c0_12, %c0_13, %c0_14], %20 {strides = array<i32>} : memref<2x8x8xf32, #tpu.memory_space<vmem>>, vector<2x8x8xf32>,
    %cst_15 = arith.constant dense<0.000000e+00> : vector<2x8x128xf32>
    %22 = tpu.matmul %20, %1, %cst_15 {dimension_numbers = #tpu.dot_dimension_numbers<[2], [1], [1], [2], [0, 0, 0, 1, 1, 2], [0], [0]>} : vector<2x8x8xf32>, vector<2x8x128xf32>, vector<2x8x128xf32> -> vector<2x8x128xf32>
    %23 = vector.shape_cast %22 : vector<2x8x128xf32> to vector<16x128xf32>
    %c0_16 = arith.constant 0 : index
    %c0_17 = arith.constant 0 : index
    %24 = vector.load %arg6[%c0_16, %c0_17] : memref<128x128xf32, #tpu.memory_space<vmem>>, vector<128x128xf32>
    %cst_18 = arith.constant dense<0.000000e+00> : vector<16x128xf32>
    %25 = tpu.matmul %23, %24, %cst_18 {dimension_numbers = #tpu.dot_dimension_numbers<[1], [0], [0], [1], [0, 0, 1, 1], [], []>} : vector<16x128xf32>, vector<128x128xf32>, vector<16x128xf32> -> vector<16x128xf32>
    %c0_19 = arith.constant 0 : index
    %c0_20 = arith.constant 0 : index
    %26 = vector.load %arg7[%c0_19, %c0_20] : memref<128x128xf32, #tpu.memory_space<vmem>>, vector<128x128xf32>
    %cst_21 = arith.constant dense<0.000000e+00> : vector<16x128xf32>
    %27 = tpu.matmul %2, %26, %cst_21 {dimension_numbers = #tpu.dot_dimension_numbers<[1], [0], [0], [1], [0, 0, 1, 1], [], []>} : vector<16x128xf32>, vector<128x128xf32>, vector<16x128xf32> -> vector<16x128xf32>
    %28 = arith.addf %25, %27 : vector<16x128xf32>
    %c0_22 = arith.constant 0 : index
    %c0_23 = arith.constant 0 : index
    %29 = vector.load %arg8[%c0_22, %c0_23] : memref<1x128xf32, #tpu.memory_space<vmem>>, vector<1x128xf32>
    %30 = vector.broadcast %29 : vector<1x128xf32> to vector<16x128xf32>
    %31 = arith.addf %28, %30 : vector<16x128xf32>
    %32 = math.tanh %31 : vector<16x128xf32>
    %33 = vector.shape_cast %32 : vector<16x128xf32> to vector<2x8x128xf32>
    %c0_24 = arith.constant 0 : index
    %c0_25 = arith.constant 0 : index
    %c0_26 = arith.constant 0 : index
    %34 = vector.load %arg9[%c0_24, %c0_25, %c0_26] : memref<2x8x128xf32, #tpu.memory_space<vmem>>, vector<2x8x128xf32>
    tpu.vector_store %arg9[%c0_24, %c0_25, %c0_26], %33 {strides = array<i32>} : memref<2x8x128xf32, #tpu.memory_space<vmem>>, vector<2x8x128xf32>,
    return
  }
  func.func @transform_0(%arg0: i32, %arg1: i32) -> (i32, i32, i32) {
    %c0_i32 = arith.constant 0 : i32
    %c0_i32_0 = arith.constant 0 : i32
    return %arg0, %arg1, %c0_i32 : i32, i32, i32
  }
  func.func @transform_1(%arg0: i32, %arg1: i32) -> (i32, i32, i32) {
    %c0_i32 = arith.constant 0 : i32
    %c0_i32_0 = arith.constant 0 : i32
    %c0_i32_1 = arith.constant 0 : i32
    return %arg0, %c0_i32, %c0_i32_0 : i32, i32, i32
  }
  func.func @transform_2(%arg0: i32, %arg1: i32) -> (i32, i32) {
    %c0_i32 = arith.constant 0 : i32
    %c0_i32_0 = arith.constant 0 : i32
    %c0_i32_1 = arith.constant 0 : i32
    return %c0_i32, %c0_i32_0 : i32, i32
  }
  func.func @transform_3(%arg0: i32, %arg1: i32) -> (i32, i32) {
    %c0_i32 = arith.constant 0 : i32
    %c0_i32_0 = arith.constant 0 : i32
    %c0_i32_1 = arith.constant 0 : i32
    return %c0_i32, %c0_i32_0 : i32, i32
  }
  func.func @transform_4(%arg0: i32, %arg1: i32) -> (i32, i32) {
    %c0_i32 = arith.constant 0 : i32
    %c0_i32_0 = arith.constant 0 : i32
    %c0_i32_1 = arith.constant 0 : i32
    return %c0_i32, %c0_i32_0 : i32, i32
  }
  func.func @transform_5(%arg0: i32, %arg1: i32) -> (i32, i32) {
    %c0_i32 = arith.constant 0 : i32
    %c0_i32_0 = arith.constant 0 : i32
    %c0_i32_1 = arith.constant 0 : i32
    return %c0_i32, %c0_i32_0 : i32, i32
  }
  func.func @transform_6(%arg0: i32, %arg1: i32) -> (i32, i32) {
    %c0_i32 = arith.constant 0 : i32
    %c0_i32_0 = arith.constant 0 : i32
    %c0_i32_1 = arith.constant 0 : i32
    return %c0_i32, %c0_i32_0 : i32, i32
  }
  func.func @transform_7(%arg0: i32, %arg1: i32) -> (i32, i32, i32) {
    %c0_i32 = arith.constant 0 : i32
    %c0_i32_0 = arith.constant 0 : i32
    return %arg0, %arg1, %c0_i32 : i32, i32, i32
  }
  func.func @transform_8(%arg0: i32, %arg1: i32) -> (i32, i32, i32) {
    %c0_i32 = arith.constant 0 : i32
    %c0_i32_0 = arith.constant 0 : i32
    return %arg0, %arg1, %c0_i32 : i32, i32, i32
  }
}

</mosaic_0001>

<bundles_post_ra>
// kernel: tpu_custom_call.1
= control target key start
LH: loop header
LB: loop body
LE: loop exit
PB: predicated region body
PF: predicated region fallthrough
CT: control target
= control target key end

     0   :  { %14 = vsyncpa [#allocation3], 0  ;;  %s1426_s0 = inlined_call_operand.hbm [shape: f32[2,8,128], index: 0, kind: input, shape index: {}]   ;;  %s1427_s1 = inlined_call_operand.hbm [shape: f32[2,8,128], index: 1, kind: input, shape index: {}]   ;;  %s1428_s2 = inlined_call_operand.vmem [shape: f32[1,8], index: 2, kind: input, shape index: {}]   ;;  %s1429_s3 = inlined_call_operand.hbm [shape: f32[128,128], index: 3, kind: input, shape index: {}]   ;;  %s1430_s4 = inlined_call_operand.hbm [shape: f32[128,128], index: 4, kind: input, shape index: {}]   ;;  %s1431_s5 = inlined_call_operand.hbm [shape: f32[128,128], index: 5, kind: input, shape index: {}]   ;;  %s1432_s6 = inlined_call_operand.vmem [shape: f32[1,128], index: 6, kind: input, shape index: {}]   ;;  %s1433_s7 = inlined_call_operand.hbm [shape: f32[2,8,128], index: 7, kind: output, shape index: {0}]   ;;  %s1434_s8 = inlined_call_operand.hbm [shape: f32[2,8,8], index: 8, kind: output, shape index: {1}]  }
   0x1   :  { %15 = vsyncpa [#allocation6], 0 }
   0x2   :  { %16 = vsyncpa [#allocation9], 0 }
   0x3   :  { %17 = vsyncpa [#allocation4], 0 }
   0x4   :  { %18 = vsyncpa [#allocation13], 0  ;;  %s1217_s27 = smov [#allocation5]   ;;  %s1218_s29 = smov [#allocation8]  }
   0x5   :  { %s36_s28 = sshll.u32 %s1217_s27, 4  ;;  %s62_s30 = sshll.u32 %s1218_s29, 4  ;;  %s37_s28 = int_to_ptr.vmem [resolvable:$true] %s36_s28  ;;  %s1273_s30 = int_to_ptr.vmem [resolvable:$true] %s62_s30 }
   0x6   :  { %s1053_s11 = scalar_lea.hbm %s1427_s1, 256 }
   0x7   :  { %p1054_p0 = scmp.ne.s32.totalorder %s1427_s1, %s1053_s11  ;;  %p1057_p1 = scmp.lt.u32.totalorder %s1053_s11, %s1427_s1 }
   0x9   :  { %p1059_p2 = pnand %p1057_p1, %p1054_p0 }
   0xb   :  { %1062 = shalt.err (!%p1059_p2)
}
   0xc   :  { %s1063_s16 = scalar_lea.vmem %s37_s28, 256  ;;  %p1068_p4 = scmp.lt.s32.totalorder %s37_s28, %s37_s28 }
   0xd   :  { %p1064_p3 = scmp.ne.s32.totalorder %s37_s28, %s1063_s16  ;;  %p1069_p5 = scmp.lt.s32.totalorder %s1063_s16, %s1063_s16 }
   0xf   :  { %p1070_p6 = por %p1069_p5, %p1068_p4 }
  0x11   :  { %p1071_p7 = pnand %p1070_p6, %p1064_p3 }
  0x13   :  { %1074 = shalt.err (!%p1071_p7)
}
  0x14   :  { %s1219_s17 = smov 128   ;;  %s1220_s18 = smov 8  }
  0x15   :  { %42 = dma.hbm_to_vmem [thread:$0]  %s1427_s1, 256, %s37_s28, [#allocation6], %s1219_s17, %s1219_s17, %s1220_s18  }
  0x16   :  { %s1075_s23 = scalar_lea.hbm %s1430_s4, 2048 }
  0x17   :  { %p1076_p8 = scmp.ne.s32.totalorder %s1430_s4, %s1075_s23  ;;  %p1079_p9 = scmp.lt.u32.totalorder %s1075_s23, %s1430_s4 }
  0x19   :  { %p1081_p10 = pnand %p1079_p9, %p1076_p8 }
  0x1b   :  { %1084 = shalt.err (!%p1081_p10)
}
  0x1c   :  { %s1085_s29 = scalar_lea.vmem %s1273_s30, 2048  ;;  %p1090_p12 = scmp.lt.s32.totalorder %s1273_s30, %s1273_s30 }
  0x1d   :  { %p1086_p11 = scmp.ne.s32.totalorder %s1273_s30, %s1085_s29  ;;  %p1091_p13 = scmp.lt.s32.totalorder %s1085_s29, %s1085_s29 }
  0x1f   :  { %p1092_p0 = por %p1091_p13, %p1090_p12 }
  0x21   :  { %p1093_p1 = pnand %p1092_p0, %p1086_p11 }
  0x23   :  { %1096 = shalt.err (!%p1093_p1)
}
  0x24   :  { %68 = dma.hbm_to_vmem [thread:$0]  %s1430_s4, 2048, %s1273_s30, [#allocation9], %s1219_s17, %s1219_s17, %s1220_s18  }
  0x25   :  { %s1221_s9 = smov [#allocation2]   ;;  %s1222_s11 = smov [#allocation7]  }
  0x26   :  { %s24_s10 = sshll.u32 %s1221_s9, 4  ;;  %s50_s12 = sshll.u32 %s1222_s11, 4  ;;  %s25_s10 = int_to_ptr.vmem [resolvable:$true] %s24_s10  ;;  %s1310_s12 = int_to_ptr.vmem [resolvable:$true] %s50_s12 }
  0x27   :  { %s1097_s15 = scalar_lea.hbm %s1426_s0, 256 }
  0x28   :  { %p1098_p2 = scmp.ne.s32.totalorder %s1426_s0, %s1097_s15  ;;  %p1101_p3 = scmp.lt.u32.totalorder %s1097_s15, %s1426_s0 }
  0x2a   :  { %p1103_p4 = pnand %p1101_p3, %p1098_p2 }
  0x2c   :  { %1106 = shalt.err (!%p1103_p4)
}
  0x2d   :  { %s1107_s4 = scalar_lea.vmem %s25_s10, 256  ;;  %p1112_p6 = scmp.lt.s32.totalorder %s25_s10, %s25_s10 }
  0x2e   :  { %p1108_p5 = scmp.ne.s32.totalorder %s25_s10, %s1107_s4  ;;  %p1113_p7 = scmp.lt.s32.totalorder %s1107_s4, %s1107_s4 }
  0x30   :  { %p1114_p8 = por %p1113_p7, %p1112_p6 }
  0x32   :  { %p1115_p9 = pnand %p1114_p8, %p1108_p5 }
  0x34   :  { %1118 = shalt.err (!%p1115_p9)
}
  0x35   :  { %30 = dma.hbm_to_vmem [thread:$0]  %s1426_s0, 256, %s25_s10, [#allocation3], %s1219_s17, %s1219_s17, %s1220_s18  }
  0x36   :  { %s1119_s25 = scalar_lea.hbm %s1429_s3, 2048 }
  0x37   :  { %p1120_p10 = scmp.ne.s32.totalorder %s1429_s3, %s1119_s25  ;;  %p1123_p11 = scmp.lt.u32.totalorder %s1119_s25, %s1429_s3 }
  0x39   :  { %p1125_p12 = pnand %p1123_p11, %p1120_p10 }
  0x3b   :  { %1128 = shalt.err (!%p1125_p12)
}
  0x3c   :  { %s1129_s28 = scalar_lea.vmem %s1310_s12, 2048  ;;  %p1134_p0 = scmp.lt.s32.totalorder %s1310_s12, %s1310_s12 }
  0x3d   :  { %p1130_p13 = scmp.ne.s32.totalorder %s1310_s12, %s1129_s28  ;;  %p1135_p1 = scmp.lt.s32.totalorder %s1129_s28, %s1129_s28 }
  0x3f   :  { %p1136_p2 = por %p1135_p1, %p1134_p0 }
  0x41   :  { %p1137_p3 = pnand %p1136_p2, %p1130_p13 }
  0x43   :  { %1140 = shalt.err (!%p1137_p3)
}
  0x44   :  { %56 = dma.hbm_to_vmem [thread:$0]  %s1429_s3, 2048, %s1310_s12, [#allocation6], %s1219_s17, %s1219_s17, %s1220_s18  }
  0x45   :  { %s1223_s10 = smov [#allocation10]   ;;  %s1141_s15 = scalar_lea.hbm %s1431_s5, 2048 }
  0x46   :  { %s74_s11 = sshll.u32 %s1223_s10, 4  ;;  %p1142_p4 = scmp.ne.s32.totalorder %s1431_s5, %s1141_s15  ;;  %s75_s11 = int_to_ptr.vmem [resolvable:$true] %s74_s11 }
  0x47   :  { %p1145_p5 = scmp.lt.u32.totalorder %s1141_s15, %s1431_s5 }
  0x49   :  { %p1147_p6 = pnand %p1145_p5, %p1142_p4 }
  0x4b   :  { %1150 = shalt.err (!%p1147_p6)
}
  0x4c   :  { %s1151_s4 = scalar_lea.vmem %s75_s11, 2048  ;;  %p1156_p8 = scmp.lt.s32.totalorder %s75_s11, %s75_s11 }
  0x4d   :  { %p1152_p7 = scmp.ne.s32.totalorder %s75_s11, %s1151_s4  ;;  %p1157_p9 = scmp.lt.s32.totalorder %s1151_s4, %s1151_s4 }
  0x4f   :  { %p1158_p10 = por %p1157_p9, %p1156_p8 }
  0x51   :  { %p1159_p11 = pnand %p1158_p10, %p1152_p7 }
  0x53   :  { %1162 = shalt.err (!%p1159_p11)
}
  0x54   :  { %80 = dma.hbm_to_vmem [thread:$0]  %s1431_s5, 2048, %s75_s11, [#allocation9], %s1219_s17, %s1219_s17, %s1220_s18  }
  0x55   :  { %1207 = dma.done.wait [#allocation3], 256  }
  0x56   :  { %1208 = vsyncadd [#allocation3], 4294967040 }
  0x57   :  { %1209 = dma.done.wait [#allocation6], 2304  }
  0x58   :  { %1210 = vsyncadd [#allocation6], 4294964992 }
  0x59   :  { %1211 = dma.done.wait [#allocation9], 4096  }
  0x5a   :  { %1212 = vsyncadd [#allocation9], 4294963200  ;;  %v1224_v0 = vmov 0.0   ;;  %v102_v1 = vld [vmem:[#allocation7] sm:$0xff]  ;;  %v103_v2 = vld [vmem:[#allocation7 + $0x8] sm:$0xff]  ;;  %vm1225_vm0 = vmmov 0  }
  0x5b   :  { %842 = vmatprep.subr.mxu1 %v1224_v0  ;;  %v104_v3 = vld [vmem:[#allocation7 + $0x10] sm:$0xff]  ;;  %v932_v4 = vpack.c.bf16 %v103_v2, %v102_v1  ;;  %v105_v5 = vld [vmem:[#allocation7 + $0x18] sm:$0xff]  ;;  %v106_v7 = vld [vmem:[#allocation7 + $0x20] sm:$0xff]  ;;  %844 = vmatprep.mubr.msk.f32.mxu1 %vm1225_vm0, %v1224_v0  ;;  %vm340_vm1 = vcmask 64512  }
  0x5c   :  { %v936_v6 = vpack.c.bf16 %v105_v5, %v104_v3  ;;  %v107_v8 = vld [vmem:[#allocation7 + $0x28] sm:$0xff]  ;;  %v98_v10 = vld [vmem:[#allocation2] sm:$0xff]  ;;  %v108_v11 = vld [vmem:[#allocation7 + $0x30] sm:$0xff] }
  0x5d   :  { %933 = vmatprep.subr.bf16.mxu0 %v932_v4  ;;  %v940_v9 = vpack.c.bf16 %v107_v8, %v106_v7  ;;  %v109_v12 = vld [vmem:[#allocation7 + $0x38] sm:$0xff]  ;;  %839 = vmatprep.mubr.f32.mxu0 %v98_v10  ;;  %v100_v13 = vld [vmem:[#allocation5] sm:$0xff]  ;;  %v110_v15 = vld [vmem:[#allocation7 + $0x40] sm:$0xff] }
  0x5e   :  { %935 = vmatpush3.bf16.msra.mxu0 %v932_v4  ;;  %843 = vmatpush3.xpose.msra.mxu1 %v100_v13  ;;  %v944_v14 = vpack.c.bf16 %v109_v12, %v108_v11  ;;  %v111_v16 = vld [vmem:[#allocation7 + $0x48] sm:$0xff]  ;;  %v112_v18 = vld [vmem:[#allocation7 + $0x50] sm:$0xff]  ;;  %v113_v19 = vld [vmem:[#allocation7 + $0x58] sm:$0xff] }
  0x5f   :  { %937 = vmatprep.subr.bf16.mxu0 %v936_v6  ;;  %847 = vmatprep.subr.mxu1 %v1224_v0  ;;  %v948_v17 = vpack.c.bf16 %v111_v16, %v110_v15  ;;  %v952_v20 = vpack.c.bf16 %v113_v19, %v112_v18  ;;  %v114_v21 = vld [vmem:[#allocation7 + $0x60] sm:$0xff]  ;;  %v115_v22 = vld [vmem:[#allocation7 + $0x68] sm:$0xff]  ;;  %v116_v24 = vld [vmem:[#allocation7 + $0x70] sm:$0xff] }
  0x60   :  { %v956_v23 = vpack.c.bf16 %v115_v22, %v114_v21  ;;  %v117_v25 = vld [vmem:[#allocation7 + $0x78] sm:$0xff]  ;;  %v1364_v27 = vld [vmem:[#allocation2 + $0x8] sm:$0xff]  ;;  %v741_v31 = vld [vmem:[%s1428_s2] ss:$0 sm:$0xff]  ;;  %s1226_s2 = smov [#allocation12]  }
  0x61   :  { %v960_v26 = vpack.c.bf16 %v117_v25, %v116_v24  ;;  %v1369_v29 = vld [vmem:[#allocation5 + $0x8] sm:$0xff]  ;;  %v527_v50 = vld [vmem:[#allocation10] sm:$0xff]  ;;  %v528_v51 = vld [vmem:[#allocation10 + $0x8] sm:$0xff]  ;;  %s723_s22 = sshll.u32 %s1226_s2, 4  ;;  %s724_s22 = int_to_ptr.vmem [resolvable:$true] %s723_s22 }
  0x62   :  { %939 = vmatpush3.bf16.msra.mxu0 %v936_v6  ;;  %v964_v52 = vpack.c.bf16 %v528_v51, %v527_v50  ;;  %v529_v53 = vld [vmem:[#allocation10 + $0x10] sm:$0xff]  ;;  %v530_v54 = vld [vmem:[#allocation10 + $0x18] sm:$0xff]  ;;  %v531_v56 = vld [vmem:[#allocation10 + $0x20] sm:$0xff]  ;;  %s1163_s23 = scalar_lea.vmem %s724_s22, 256  ;;  %p1168_p13 = scmp.lt.s32.totalorder %s724_s22, %s724_s22 }
  0x63   :  { %941 = vmatprep.subr.bf16.mxu0 %v940_v9  ;;  %v968_v55 = vpack.c.bf16 %v530_v54, %v529_v53  ;;  %v532_v57 = vld [vmem:[#allocation10 + $0x28] sm:$0xff]  ;;  %v533_v59 = vld [vmem:[#allocation10 + $0x30] sm:$0xff]  ;;  %v534_v60 = vld [vmem:[#allocation10 + $0x38] sm:$0xff]  ;;  %p1164_p12 = scmp.ne.s32.totalorder %s724_s22, %s1163_s23  ;;  %p1169_p0 = scmp.lt.s32.totalorder %s1163_s23, %s1163_s23 }
  0x64   :  { %v972_v58 = vpack.c.bf16 %v532_v57, %v531_v56  ;;  %v976_v61 = vpack.c.bf16 %v534_v60, %v533_v59  ;;  %v535_v62 = vld [vmem:[#allocation10 + $0x40] sm:$0xff]  ;;  %v536_v63 = vld [vmem:[#allocation10 + $0x48] sm:$0xff]  ;;  %v537_v2 = vld [vmem:[#allocation10 + $0x50] sm:$0xff] }
  0x65   :  { %v980_v1 = vpack.c.bf16 %v536_v63, %v535_v62  ;;  %v538_v3 = vld [vmem:[#allocation10 + $0x58] sm:$0xff]  ;;  %v539_v5 = vld [vmem:[#allocation10 + $0x60] sm:$0xff]  ;;  %v540_v6 = vld [vmem:[#allocation10 + $0x68] sm:$0xff]  ;;  %p1170_p1 = por %p1169_p0, %p1168_p13 }
  0x66   :  { %943 = vmatpush3.bf16.msra.mxu0 %v940_v9  ;;  %v984_v4 = vpack.c.bf16 %v538_v3, %v537_v2  ;;  %v988_v7 = vpack.c.bf16 %v540_v6, %v539_v5  ;;  %v512_v11 = vld [vmem:[#allocation8 + $0x8] sm:$0xff]  ;;  %v513_v15 = vld [vmem:[#allocation8 + $0x10] sm:$0xff]  ;;  %v514_v16 = vld [vmem:[#allocation8 + $0x18] sm:$0xff] }
  0x67   :  { %945 = vmatprep.subr.bf16.mxu0 %v944_v14  ;;  %v1000_v19 = vpack.c.bf16 %v514_v16, %v513_v15  ;;  %v516_v21 = vld [vmem:[#allocation8 + $0x28] sm:$0xff]  ;;  %v518_v24 = vld [vmem:[#allocation8 + $0x38] sm:$0xff]  ;;  %p1171_p2 = pnand %p1170_p1, %p1164_p12 }
  0x6a   :  { %947 = vmatpush3.bf16.msra.mxu0 %v944_v14 }
  0x6b   :  { %949 = vmatprep.subr.bf16.mxu0 %v948_v17 }
  0x6e   :  { %951 = vmatpush3.bf16.msra.mxu0 %v948_v17 }
  0x6f   :  { %953 = vmatprep.subr.bf16.mxu0 %v952_v20 }
  0x72   :  { %955 = vmatpush3.bf16.msra.mxu0 %v952_v20  ;;  %v515_v20 = vld [vmem:[#allocation8 + $0x20] sm:$0xff] }
  0x73   :  { %957 = vmatprep.subr.bf16.mxu0 %v956_v23  ;;  %v1004_v22 = vpack.c.bf16 %v516_v21, %v515_v20 }
  0x76   :  { %959 = vmatpush3.bf16.msra.mxu0 %v956_v23  ;;  %v517_v23 = vld [vmem:[#allocation8 + $0x30] sm:$0xff] }
  0x77   :  { %961 = vmatprep.subr.bf16.mxu0 %v960_v26  ;;  %v1008_v25 = vpack.c.bf16 %v518_v24, %v517_v23 }
  0x7a   :  { %963 = vmatpush3.bf16.msra.mxu0 %v960_v26  ;;  %v519_v26 = vld [vmem:[#allocation8 + $0x40] sm:$0xff] }
  0x7b   :  { %965 = vmatprep.subr.bf16.mxu0 %v964_v52 }
  0x7d   :  { %840 = vmatmul.mubr.f32.vlgmr.msra.gmra.mrb[0].mxu0 %v1364_v27 }
  0x7e   :  { %894 = vmatprep.mubr.f32.mxu0 %v98_v10  ;;  %967 = vmatpush3.bf16.msra.mxu0 %v964_v52  ;;  %v511_v10 = vld [vmem:[#allocation8] sm:$0xff] }
  0x7f   :  { %969 = vmatprep.subr.bf16.mxu0 %v968_v55  ;;  %v996_v14 = vpack.c.bf16 %v512_v11, %v511_v10 }
  0x82   :  { %971 = vmatpush3.bf16.msra.mxu0 %v968_v55 }
  0x83   :  { %973 = vmatprep.subr.bf16.mxu0 %v972_v58 }
  0x86   :  { %975 = vmatpush3.bf16.msra.mxu0 %v972_v58 }
  0x87   :  { %977 = vmatprep.subr.bf16.mxu0 %v976_v61 }
  0x8a   :  { %979 = vmatpush3.bf16.msra.mxu0 %v976_v61 }
  0x8b   :  { %981 = vmatprep.subr.bf16.mxu0 %v980_v1 }
  0x8e   :  { %983 = vmatpush3.bf16.msra.mxu0 %v980_v1 }
  0x8f   :  { %985 = vmatprep.subr.bf16.mxu0 %v984_v4 }
  0x92   :  { %987 = vmatpush3.bf16.msra.mxu0 %v984_v4 }
  0x93   :  { %989 = vmatprep.subr.bf16.mxu0 %v988_v7 }
  0x96   :  { %991 = vmatpush3.bf16.msra.mxu0 %v988_v7 }
 0x150   :  { %v841_v28 = vpop.f32.mrb[0].mxu0 }
 0x151   :  { %v184_v30 = vpop.f32.mrb[1].mxu0 }
 0x152   :  { %845 = vmatmul.mubr.f32.vlgmr.msra.gmra.mrb[0].mxu1 %v184_v30  ;;  %v522_v30 = vld [vmem:[#allocation8 + $0x58] sm:$0xff] }
 0x153   :  { %848 = vmatpush3.xpose.msra.mxu1 %v1369_v29  ;;  %849 = vmatprep.mubr.msk.f32.mxu1 %vm1225_vm0, %v1224_v0 }
 0x154   :  { %852 = vmatprep.subr.mxu1 %v1224_v0 }
 0x156   :  { %850 = vmatmul.mubr.f32.vlgmr.msra.gmra.mrb[2].mxu1 %v841_v28  ;;  %v520_v28 = vld [vmem:[#allocation8 + $0x48] sm:$0xff] }
 0x157   :  { %853 = vmatpush3.msra.mxu1 %v100_v13  ;;  %854 = vmatprep.mubr.msk.f32.mxu1 %vm1225_vm0, %v1224_v0 }
 0x158   :  { %857 = vmatprep.subr.mxu1 %v1224_v0 }
 0x225   :  { %v266_v32 = vpop.f32.mrb[0].mxu1 }
 0x226   :  { %v267_v33 = vadd.f32 %v741_v31, %v266_v32  ;;  %v846_v34 = vpop.f32.mrb[1].mxu1  ;;  %v523_v32 = vld [vmem:[#allocation8 + $0x60] sm:$0xff] }
 0x228   :  { %v341_v35 = vsel %vm340_vm1, %v267_v33, -inf }
 0x229   :  { %342 = vmax.xlane.f32.xlu0 %v341_v35  ;;  %v336_v36 = vpop.f32.mrb[2].mxu1  ;;  %v541_v35 = vld [vmem:[#allocation10 + $0x70] sm:$0xff] }
 0x22a   :  { %v337_v37 = vadd.f32 %v741_v31, %v336_v36  ;;  %v851_v38 = vpop.f32.mrb[3].mxu1  ;;  %v542_v36 = vld [vmem:[#allocation10 + $0x78] sm:$0xff] }
 0x22b   :  { %v525_v38 = vld [vmem:[#allocation8 + $0x70] sm:$0xff] }
 0x22c   :  { %v344_v39 = vsel %vm340_vm1, %v337_v37, -inf }
 0x22d   :  { %345 = vmax.xlane.f32.xlu0 %v344_v39  ;;  %v526_v39 = vld [vmem:[#allocation8 + $0x78] sm:$0xff] }
 0x2b6   :  { %v343_v40 = vpop.xlane.xlu0 %342 }
 0x2b7   :  { %v347_v41 = vsub.f32 %v267_v33, %v343_v40  ;;  %v524_v33 = vld [vmem:[#allocation8 + $0x68] sm:$0xff]  ;;  %v1024_v40 = vpack.c.bf16 %v526_v39, %v525_v38 }
 0x2b8   :  { %v1020_v34 = vpack.c.bf16 %v524_v33, %v523_v32 }
 0x2b9   :  { %v349_v42 = vmul.f32 1.442695, %v347_v41 }
 0x2ba   :  { %v346_v43 = vpop.xlane.xlu0 %345 }
 0x2bb   :  { %1041 = vpow2.f32 %v349_v42  ;;  %v348_v44 = vsub.f32 %v337_v37, %v346_v43  ;;  %v992_v37 = vpack.c.bf16 %v542_v36, %v541_v35 }
 0x2bd   :  { %v351_v45 = vmul.f32 1.442695, %v348_v44  ;;  %993 = vmatprep.subr.bf16.mxu0 %v992_v37 }
 0x2be   :  { %995 = vmatpush3.bf16.msra.mxu0 %v992_v37 }
 0x2bf   :  { %1043 = vpow2.f32 %v351_v45 }
 0x2c1   :  { %895 = vmatmul.mubr.f32.vlgmr.msra.gmra.mrb[2].mxu0 %v1364_v27 }
 0x2c5   :  { %v1042_v46 = vpop.eup %1041 }
 0x2c6   :  { %v353_v47 = vsel %vm340_vm1, %v1042_v46, 0.0 }
 0x2c7   :  { %354 = vadd.xlane.f32.xlu1 %v353_v47 }
 0x2c9   :  { %v1044_v48 = vpop.eup %1043 }
 0x2ca   :  { %v356_v49 = vsel %vm340_vm1, %v1044_v48, 0.0 }
 0x2cb   :  { %357 = vadd.xlane.f32.xlu1 %v356_v49 }
 0x354   :  { %v355_v8 = vpop.xlane.xlu1 %354 }
 0x355   :  { %1045 = vrcp.f32 %v355_v8 }
 0x358   :  { %v358_v9 = vpop.xlane.xlu1 %357 }
 0x359   :  { %1047 = vrcp.f32 %v358_v9 }
 0x35f   :  { %v1046_v12 = vpop.eup %1045 }
 0x360   :  { %v361_v13 = vmul.f32 %v1046_v12, %v1042_v46 }
 0x362   :  { %363 = vst.msk [vmem:[#allocation12] sm:$0xff] %vm340_vm1, %v361_v13  ;;  %855 = vmatmul.mubr.msk.f32.vlgmr.msra.gmra.mrb[4].mxu1 %vm340_vm1, %v361_v13 }
 0x363   :  { %v1048_v17 = vpop.eup %1047  ;;  %858 = vmatpush3.msra.mxu1 %v1369_v29  ;;  %859 = vmatprep.mubr.msk.f32.mxu1 %vm1225_vm0, %v1224_v0  ;;  %v1012_v0 = vpack.c.bf16 %v520_v28, %v519_v26  ;;  %v521_v29 = vld [vmem:[#allocation8 + $0x50] sm:$0xff] }
 0x364   :  { %v362_v18 = vmul.f32 %v1048_v17, %v1044_v48  ;;  %997 = vmatprep.subr.bf16.mxu1 %v996_v14  ;;  %v1016_v31 = vpack.c.bf16 %v522_v30, %v521_v29 }
 0x366   :  { %364 = vst.msk [vmem:[#allocation12 + $0x8] sm:$0xff] %vm340_vm1, %v362_v18  ;;  %860 = vmatmul.mubr.msk.f32.vlgmr.msra.gmra.mrb[6].mxu1 %vm340_vm1, %v362_v18 }
 0x367   :  { %999 = vmatpush3.bf16.msra.mxu1 %v996_v14 }
 0x368   :  { %1001 = vmatprep.subr.bf16.mxu1 %v1000_v19 }
 0x36b   :  { %1003 = vmatpush3.bf16.msra.mxu1 %v1000_v19 }
 0x36c   :  { %1005 = vmatprep.subr.bf16.mxu1 %v1004_v22 }
 0x36f   :  { %1007 = vmatpush3.bf16.msra.mxu1 %v1004_v22 }
 0x370   :  { %1009 = vmatprep.subr.bf16.mxu1 %v1008_v25 }
 0x373   :  { %1011 = vmatpush3.bf16.msra.mxu1 %v1008_v25 }
 0x374   :  { %1013 = vmatprep.subr.bf16.mxu1 %v1012_v0 }
 0x377   :  { %1015 = vmatpush3.bf16.msra.mxu1 %v1012_v0 }
 0x378   :  { %1017 = vmatprep.subr.bf16.mxu1 %v1016_v31 }
 0x37b   :  { %1019 = vmatpush3.bf16.msra.mxu1 %v1016_v31 }
 0x37c   :  { %1021 = vmatprep.subr.bf16.mxu1 %v1020_v34 }
 0x37f   :  { %1023 = vmatpush3.bf16.msra.mxu1 %v1020_v34 }
 0x380   :  { %1025 = vmatprep.subr.bf16.mxu1 %v1024_v40 }
 0x383   :  { %1027 = vmatpush3.bf16.msra.mxu1 %v1024_v40 }
 0x394   :  { %v896_v45 = vpop.f32.mrb[2].mxu0 }
 0x395   :  { %v609_v46 = vpop.f32.mrb[3].mxu0 }
 0x435   :  { %v434_v41 = vpop.f32.mrb[4].mxu1 }
 0x436   :  { %v856_v42 = vpop.f32.mrb[5].mxu1  ;;  %929 = vmatprep.mubr.f32.mxu1 %v434_v41 }
 0x439   :  { %v507_v43 = vpop.f32.mrb[6].mxu1 }
 0x43a   :  { %v861_v44 = vpop.f32.mrb[7].mxu1  ;;  %930 = vmatmul.mubr.f32.vlgmr.msra.gmra.mrb[8].mxu1 %v507_v43 }
 0x43b   :  { %1174 = shalt.err (!%p1171_p2)
}
 0x43c   :  { %s1175_s26 = scalar_lea.hbm %s1434_s8, 256 }
 0x43d   :  { %p1176_p3 = scmp.ne.s32.totalorder %s1434_s8, %s1175_s26  ;;  %p1179_p4 = scmp.lt.u32.totalorder %s1175_s26, %s1434_s8 }
 0x43f   :  { %p1181_p5 = pnand %p1179_p4, %p1176_p3 }
 0x441   :  { %1184 = shalt.err (!%p1181_p5)
}
 0x442   :  { %729 = dma.vmem_to_hbm [thread:$0]  %s724_s22, 256, %s1434_s8, [#allocation13], %s1219_s17, %s1219_s17, %s1220_s18  }
 0x443   :  { %v744_v47 = vld [vmem:[%s1432_s6] ss:$0 sm:$0xff]  ;;  %s1227_s13 = smov [#allocation11]  }
 0x444   :  { %s711_s14 = sshll.u32 %s1227_s13, 4  ;;  %s712_s14 = int_to_ptr.vmem [resolvable:$true] %s711_s14 }
 0x445   :  { %s1185_s8 = scalar_lea.vmem %s712_s14, 256  ;;  %p1190_p7 = scmp.lt.s32.totalorder %s712_s14, %s712_s14 }
 0x446   :  { %p1186_p6 = scmp.ne.s32.totalorder %s712_s14, %s1185_s8  ;;  %p1191_p8 = scmp.lt.s32.totalorder %s1185_s8, %s1185_s8 }
 0x448   :  { %p1192_p9 = por %p1191_p8, %p1190_p7 }
 0x44a   :  { %p1193_p10 = pnand %p1192_p9, %p1186_p6 }
 0x50d   :  { %v931_v27 = vpop.f32.mrb[8].mxu1 }
 0x50e   :  { %v690_v48 = vadd.f32 %v931_v27, %v896_v45  ;;  %v684_v49 = vpop.f32.mrb[9].mxu1 }
 0x50f   :  { %v685_v50 = vadd.f32 %v684_v49, %v609_v46 }
 0x510   :  { %v701_v51 = vadd.f32 %v744_v47, %v690_v48 }
 0x511   :  { %v700_v52 = vadd.f32 %v744_v47, %v685_v50 }
 0x512   :  { %1049 = vtanh.f32 %v701_v51 }
 0x513   :  { %1051 = vtanh.f32 %v700_v52 }
 0x51c   :  { %v1050_v53 = vpop.eup %1049 }
 0x51d   :  { %v1052_v54 = vpop.eup %1051  ;;  %705 = vst [vmem:[#allocation11 + $0x8] sm:$0xff] %v1050_v53 }
 0x51e   :  { %704 = vst [vmem:[#allocation11] sm:$0xff] %v1052_v54 }
 0x51f   :  { %1196 = shalt.err (!%p1193_p10)
}
 0x520   :  { %s1197_s16 = scalar_lea.hbm %s1433_s7, 256 }
 0x521   :  { %p1198_p11 = scmp.ne.s32.totalorder %s1433_s7, %s1197_s16  ;;  %p1201_p12 = scmp.lt.u32.totalorder %s1197_s16, %s1433_s7 }
 0x523   :  { %p1203_p13 = pnand %p1201_p12, %p1198_p11 }
 0x525   :  { %1206 = shalt.err (!%p1203_p13)
}
 0x526   :  { %717 = dma.vmem_to_hbm [thread:$0]  %s712_s14, 256, %s1433_s7, [#allocation4], %s1219_s17, %s1219_s17, %s1220_s18  }
 0x527   :  { %1213 = dma.done.wait [#allocation4], 256  }
 0x528   :  { %1214 = vsyncadd [#allocation4], 4294967040 }
 0x529   :  { %1215 = dma.done.wait [#allocation13], 256  }
 0x52a   :  { %1216 = vsyncadd [#allocation13], 4294967040 }
 0x52b   :  { %736 = vsyncpa [#allocation3], 1 }
 0x52c   :  { %737 = vsyncpa [#allocation6], 1 }
 0x52d   :  { %738 = vsyncpa [#allocation9], 1 }
 0x52e   :  { %739 = vsyncpa [#allocation4], 1 }
 0x52f   :  { %740 = vsyncpa [#allocation13], 1 }

</bundles_post_ra>
